<compile_context>
chip_gen: v6e
topology: v6e:2x2x1
jax: 0.10.0
libtpu: 0.0.40
codegen_flags: <defaults>
</compile_context>

<pallas_src>
import functools

import jax
import jax.numpy as jnp
from jax.experimental import pallas as pl
from jax.experimental.pallas import tpu as pltpu

LANES = 128
SUBLANES = 8


def _round_up(n, m):
    return (n + m - 1) // m * m


def simple_rnn_kernel(x_ref, slab_ref, out_ref, h_all_ref, *,
                      seq_len, feat, hidden, events,
                      off_wih, off_whh, off_bias, off_wfc, off_bfc):
    """Single grid point; whole model resident in VMEM.

    x_ref:     (B, F)            float32
    slab_ref:  (rows, 128)       float32  packed, lane-padded weights:
                 [off_wih : off_wih+F,    :H]    = wih   (weight_ih_l0^T)
                 [off_whh : off_whh+H,    :H]    = whh   (weight_hh_l0^T)
                 [off_bias,               :H]    = b_ih + b_hh
                 [off_wfc : off_wfc+T*H,  :T*E]  = block-diag(fc.weight^T)
                 [off_bfc,                :T*E]  = fc.bias tiled T times
    out_ref:   (B, T*E)          float32  (batch-major, single slab)
    h_all_ref: (B, T*H)          float32  VMEM scratch for hidden states
    """
    T, F, H, E = seq_len, feat, hidden, events

    # Static, tile-aligned views into the packed weight slab (1 DMA for all).
    wih = slab_ref[off_wih:off_wih + F, 0:H]            # (F, H)
    whh = slab_ref[off_whh:off_whh + H, 0:H]            # (H, H)
    bias = slab_ref[off_bias:off_bias + 1, 0:H]         # (1, H)  = b_ih + b_hh
    wfc_blk = slab_ref[off_wfc:off_wfc + T * H, 0:T * E]  # (T*H, T*E)
    bfc_blk = slab_ref[off_bfc:off_bfc + 1, 0:T * E]     # (1, T*E)

    # Input projection is identical for every timestep (input is repeated) and
    # both RNN biases are pre-folded -> only h @ whh + tanh stays on the
    # serial per-step chain.
    x_proj = jnp.dot(x_ref[...], wih,
                     preferred_element_type=jnp.float32) + bias     # (B, H)

    # Fully-unrolled recurrence (T static & small).  h_0 = 0, so step 0 needs
    # no whh matmul.  Each h is retired into the scratch slab immediately.
    h = jnp.tanh(x_proj)
    h_all_ref[:, 0:H] = h
    for i in range(1, T):
        h = jnp.tanh(x_proj
                     + jnp.dot(h, whh, preferred_element_type=jnp.float32))
        h_all_ref[:, i * H:(i + 1) * H] = h

    # Hoisted fc + sigmoid: one MXU matmul against the block-diagonal fc
    # weight (shared fc applied to every timestep), one sigmoid, one
    # batch-major store.
    # TODO(synk): dropout is identity here (eval-mode semantics); the
    # stochastic train-mode mask is not reproduced.
    logits = jnp.dot(h_all_ref[...], wfc_blk,
                     preferred_element_type=jnp.float32) + bfc_blk   # (B, T*E)
    out_ref[...] = jax.nn.sigmoid(logits)


def prepare_params(params):
    """One-time weight prep: fold biases, build block-diag fc weight, pack
    everything into a single (8,128)-aligned f32 slab.  NOT in the per-call
    path."""
    wih, whh, bih, bhh, wfc, bfc, T = (
        params["wih"], params["whh"], params["bih"], params["bhh"],
        params["wfc"], params["bfc"], params["output_size"])
    F, H = wih.shape
    H2, E = wfc.shape
    assert H == H2
    assert H <= LANES and F <= LANES and T * E <= LANES, \
        "single-lane-tile slab packing assumes each sub-array fits in 128 lanes"

    bias = bih + bhh                                         # (1, H)
    wfc_blk = jnp.kron(jnp.eye(T, dtype=wfc.dtype), wfc)     # (T*H, T*E)
    bfc_blk = jnp.tile(bfc, (1, T))                          # (1, T*E)

    def pad_block(a):
        r, c = a.shape
        rp = _round_up(max(r, 1), SUBLANES)
        return jnp.pad(a.astype(jnp.float32), ((0, rp - r), (0, LANES - c))), rp

    pieces, offsets, row = [], {}, 0
    for name, arr in (("wih", wih), ("whh", whh), ("bias", bias),
                      ("wfc", wfc_blk), ("bfc", bfc_blk)):
        p, rp = pad_block(arr)
        pieces.append(p)
        offsets[name] = row
        row += rp
    slab = jnp.concatenate(pieces, axis=0)                   # (rows, 128)

    return {
        "slab": slab, "T": T, "F": F, "H": H, "E": E,
        "off_wih": offsets["wih"], "off_whh": offsets["whh"],
        "off_bias": offsets["bias"], "off_wfc": offsets["wfc"],
        "off_bfc": offsets["bfc"],
    }


def simple_rnn_forward(x, prep):
    """x: (B, input_size) float32 -> (B, output_size, num_events) float32."""
    B = x.shape[0]
    T, F, H, E = prep["T"], prep["F"], prep["H"], prep["E"]

    kernel = functools.partial(
        simple_rnn_kernel, seq_len=T, feat=F, hidden=H, events=E,
        off_wih=prep["off_wih"], off_whh=prep["off_whh"],
        off_bias=prep["off_bias"], off_wfc=prep["off_wfc"],
        off_bfc=prep["off_bfc"])

    out_flat = pl.pallas_call(
        kernel,
        out_shape=jax.ShapeDtypeStruct((B, T * E), jnp.float32),
        in_specs=[pl.BlockSpec(memory_space=pltpu.MemorySpace.VMEM),
                  pl.BlockSpec(memory_space=pltpu.MemorySpace.VMEM)],
        out_specs=pl.BlockSpec(memory_space=pltpu.MemorySpace.VMEM),
        scratch_shapes=[pltpu.VMEM((B, T * H), jnp.float32)],
    )(x, prep["slab"])

    # Row-major reshape only (free metadata change) — no transpose.
    return out_flat.reshape(B, T, E)


def reference_forward(x, params):
    """Pure-JAX reference matching PyTorch nn.RNN(tanh) + fc + sigmoid."""
    wih, whh, bih, bhh, wfc, bfc, T = (
        params["wih"], params["whh"], params["bih"], params["bhh"],
        params["wfc"], params["bfc"], params["output_size"])
    B = x.shape[0]
    H = whh.shape[0]
    h = jnp.zeros((B, H), jnp.float32)
    outs = []
    x_proj = x @ wih + bih
    for _ in range(T):
        h = jnp.tanh(x_proj + h @ whh + bhh)
        outs.append(jax.nn.sigmoid(h @ wfc + bfc))
    return jnp.stack(outs, axis=1)  # (B, T, E)


def init_params(key, input_size, hidden_size, output_size, num_events):
    """Deterministic init mimicking PyTorch's uniform(-1/sqrt(H), 1/sqrt(H))."""
    k = 1.0 / jnp.sqrt(jnp.float32(hidden_size))
    keys = jax.random.split(key, 6)
    u = lambda kk, shape: jax.random.uniform(kk, shape, jnp.float32, -k, k)
    return {
        # stored pre-transposed: (in_dim, out_dim)
        "wih": u(keys[0], (input_size, hidden_size)),
        "whh": u(keys[1], (hidden_size, hidden_size)),
        "bih": u(keys[2], (1, hidden_size)),
        "bhh": u(keys[3], (1, hidden_size)),
        "wfc": u(keys[4], (hidden_size, num_events)),
        "bfc": u(keys[5], (1, num_events)),
        "output_size": output_size,
    }


if __name__ == "__main__":
    input_size = 16
    hidden_size = 32
    output_size = 8     # becomes the RNN sequence length
    num_events = 4
    batch = 4

    key = jax.random.PRNGKey(0)
    kx, kp = jax.random.split(key)
    x = jax.random.normal(kx, (batch, input_size), jnp.float32)
    params = init_params(kp, input_size, hidden_size, output_size, num_events)

    # One-time weight prep (outside the per-call path).
    prep = prepare_params(params)
    prep = jax.tree_util.tree_map(jax.block_until_ready, prep)

    out = simple_rnn_forward(x, prep)
    out = jax.block_until_ready(out)

    ref = reference_forward(x, params)
    assert out.shape == (batch, output_size, num_events), out.shape
    assert jnp.allclose(out, ref, atol=1e-5, rtol=1e-5), \
        f"max err {jnp.max(jnp.abs(out - ref))}"

    print("KERNEL_OK")
</pallas_src>

<mosaic_0001>
module attributes {stable_mosaic.version = 11 : i64} {
  func.func @simple_rnn_kernel(%arg0: memref<4x16xf32, #tpu.memory_space<vmem>>, %arg1: memref<320x128xf32, #tpu.memory_space<vmem>>, %arg2: memref<4x32xf32, #tpu.memory_space<vmem>>, %arg3: memref<4x256xf32, #tpu.memory_space<vmem>>) attributes {dimension_semantics = [], scalar_prefetch = 0 : i64, scratch_operands = 1 : i64, tpu.core_type = #tpu.core_type<tc>} {
    %c0 = arith.constant 0 : index
    %c0_0 = arith.constant 0 : index
    %0 = vector.load %arg1[%c0, %c0_0] : memref<320x128xf32, #tpu.memory_space<vmem>>, vector<16x32xf32>
    %c16 = arith.constant 16 : index
    %c0_1 = arith.constant 0 : index
    %1 = vector.load %arg1[%c16, %c0_1] : memref<320x128xf32, #tpu.memory_space<vmem>>, vector<32x32xf32>
    %c48 = arith.constant 48 : index
    %c0_2 = arith.constant 0 : index
    %2 = vector.load %arg1[%c48, %c0_2] : memref<320x128xf32, #tpu.memory_space<vmem>>, vector<1x32xf32>
    %c56 = arith.constant 56 : index
    %c0_3 = arith.constant 0 : index
    %3 = vector.load %arg1[%c56, %c0_3] : memref<320x128xf32, #tpu.memory_space<vmem>>, vector<256x32xf32>
    %c312 = arith.constant 312 : index
    %c0_4 = arith.constant 0 : index
    %4 = vector.load %arg1[%c312, %c0_4] : memref<320x128xf32, #tpu.memory_space<vmem>>, vector<1x32xf32>
    %c0_5 = arith.constant 0 : index
    %c0_6 = arith.constant 0 : index
    %5 = vector.load %arg0[%c0_5, %c0_6] : memref<4x16xf32, #tpu.memory_space<vmem>>, vector<4x16xf32>
    %cst = arith.constant dense<0.000000e+00> : vector<4x32xf32>
    %6 = tpu.matmul %5, %0, %cst {dimension_numbers = #tpu.dot_dimension_numbers<[1], [0], [0], [1], [0, 0, 1, 1], [], []>} : vector<4x16xf32>, vector<16x32xf32>, vector<4x32xf32> -> vector<4x32xf32>
    %7 = vector.broadcast %2 : vector<1x32xf32> to vector<4x32xf32>
    %8 = arith.addf %6, %7 : vector<4x32xf32>
    %9 = math.tanh %8 : vector<4x32xf32>
    %c0_7 = arith.constant 0 : index
    %c0_8 = arith.constant 0 : index
    %10 = vector.load %arg3[%c0_7, %c0_8] : memref<4x256xf32, #tpu.memory_space<vmem>>, vector<4x32xf32>
    tpu.vector_store %arg3[%c0_7, %c0_8], %9 {strides = array<i32>} : memref<4x256xf32, #tpu.memory_space<vmem>>, vector<4x32xf32>,
    %cst_9 = arith.constant dense<0.000000e+00> : vector<4x32xf32>
    %11 = tpu.matmul %9, %1, %cst_9 {dimension_numbers = #tpu.dot_dimension_numbers<[1], [0], [0], [1], [0, 0, 1, 1], [], []>} : vector<4x32xf32>, vector<32x32xf32>, vector<4x32xf32> -> vector<4x32xf32>
    %12 = arith.addf %8, %11 : vector<4x32xf32>
    %13 = math.tanh %12 : vector<4x32xf32>
    %c0_10 = arith.constant 0 : index
    %c32 = arith.constant 32 : index
    %14 = vector.load %arg3[%c0_10, %c32] : memref<4x256xf32, #tpu.memory_space<vmem>>, vector<4x32xf32>
    tpu.vector_store %arg3[%c0_10, %c32], %13 {strides = array<i32>} : memref<4x256xf32, #tpu.memory_space<vmem>>, vector<4x32xf32>,
    %cst_11 = arith.constant dense<0.000000e+00> : vector<4x32xf32>
    %15 = tpu.matmul %13, %1, %cst_11 {dimension_numbers = #tpu.dot_dimension_numbers<[1], [0], [0], [1], [0, 0, 1, 1], [], []>} : vector<4x32xf32>, vector<32x32xf32>, vector<4x32xf32> -> vector<4x32xf32>
    %16 = arith.addf %8, %15 : vector<4x32xf32>
    %17 = math.tanh %16 : vector<4x32xf32>
    %c0_12 = arith.constant 0 : index
    %c64 = arith.constant 64 : index
    %18 = vector.load %arg3[%c0_12, %c64] : memref<4x256xf32, #tpu.memory_space<vmem>>, vector<4x32xf32>
    tpu.vector_store %arg3[%c0_12, %c64], %17 {strides = array<i32>} : memref<4x256xf32, #tpu.memory_space<vmem>>, vector<4x32xf32>,
    %cst_13 = arith.constant dense<0.000000e+00> : vector<4x32xf32>
    %19 = tpu.matmul %17, %1, %cst_13 {dimension_numbers = #tpu.dot_dimension_numbers<[1], [0], [0], [1], [0, 0, 1, 1], [], []>} : vector<4x32xf32>, vector<32x32xf32>, vector<4x32xf32> -> vector<4x32xf32>
    %20 = arith.addf %8, %19 : vector<4x32xf32>
    %21 = math.tanh %20 : vector<4x32xf32>
    %c0_14 = arith.constant 0 : index
    %c96 = arith.constant 96 : index
    %22 = vector.load %arg3[%c0_14, %c96] : memref<4x256xf32, #tpu.memory_space<vmem>>, vector<4x32xf32>
    tpu.vector_store %arg3[%c0_14, %c96], %21 {strides = array<i32>} : memref<4x256xf32, #tpu.memory_space<vmem>>, vector<4x32xf32>,
    %cst_15 = arith.constant dense<0.000000e+00> : vector<4x32xf32>
    %23 = tpu.matmul %21, %1, %cst_15 {dimension_numbers = #tpu.dot_dimension_numbers<[1], [0], [0], [1], [0, 0, 1, 1], [], []>} : vector<4x32xf32>, vector<32x32xf32>, vector<4x32xf32> -> vector<4x32xf32>
    %24 = arith.addf %8, %23 : vector<4x32xf32>
    %25 = math.tanh %24 : vector<4x32xf32>
    %c0_16 = arith.constant 0 : index
    %c128 = arith.constant 128 : index
    %26 = vector.load %arg3[%c0_16, %c128] : memref<4x256xf32, #tpu.memory_space<vmem>>, vector<4x32xf32>
    tpu.vector_store %arg3[%c0_16, %c128], %25 {strides = array<i32>} : memref<4x256xf32, #tpu.memory_space<vmem>>, vector<4x32xf32>,
    %cst_17 = arith.constant dense<0.000000e+00> : vector<4x32xf32>
    %27 = tpu.matmul %25, %1, %cst_17 {dimension_numbers = #tpu.dot_dimension_numbers<[1], [0], [0], [1], [0, 0, 1, 1], [], []>} : vector<4x32xf32>, vector<32x32xf32>, vector<4x32xf32> -> vector<4x32xf32>
    %28 = arith.addf %8, %27 : vector<4x32xf32>
    %29 = math.tanh %28 : vector<4x32xf32>
    %c0_18 = arith.constant 0 : index
    %c160 = arith.constant 160 : index
    %30 = vector.load %arg3[%c0_18, %c160] : memref<4x256xf32, #tpu.memory_space<vmem>>, vector<4x32xf32>
    tpu.vector_store %arg3[%c0_18, %c160], %29 {strides = array<i32>} : memref<4x256xf32, #tpu.memory_space<vmem>>, vector<4x32xf32>,
    %cst_19 = arith.constant dense<0.000000e+00> : vector<4x32xf32>
    %31 = tpu.matmul %29, %1, %cst_19 {dimension_numbers = #tpu.dot_dimension_numbers<[1], [0], [0], [1], [0, 0, 1, 1], [], []>} : vector<4x32xf32>, vector<32x32xf32>, vector<4x32xf32> -> vector<4x32xf32>
    %32 = arith.addf %8, %31 : vector<4x32xf32>
    %33 = math.tanh %32 : vector<4x32xf32>
    %c0_20 = arith.constant 0 : index
    %c192 = arith.constant 192 : index
    %34 = vector.load %arg3[%c0_20, %c192] : memref<4x256xf32, #tpu.memory_space<vmem>>, vector<4x32xf32>
    tpu.vector_store %arg3[%c0_20, %c192], %33 {strides = array<i32>} : memref<4x256xf32, #tpu.memory_space<vmem>>, vector<4x32xf32>,
    %cst_21 = arith.constant dense<0.000000e+00> : vector<4x32xf32>
    %35 = tpu.matmul %33, %1, %cst_21 {dimension_numbers = #tpu.dot_dimension_numbers<[1], [0], [0], [1], [0, 0, 1, 1], [], []>} : vector<4x32xf32>, vector<32x32xf32>, vector<4x32xf32> -> vector<4x32xf32>
    %36 = arith.addf %8, %35 : vector<4x32xf32>
    %37 = math.tanh %36 : vector<4x32xf32>
    %c0_22 = arith.constant 0 : index
    %c224 = arith.constant 224 : index
    %38 = vector.load %arg3[%c0_22, %c224] : memref<4x256xf32, #tpu.memory_space<vmem>>, vector<4x32xf32>
    tpu.vector_store %arg3[%c0_22, %c224], %37 {strides = array<i32>} : memref<4x256xf32, #tpu.memory_space<vmem>>, vector<4x32xf32>,
    %c0_23 = arith.constant 0 : index
    %c0_24 = arith.constant 0 : index
    %39 = vector.load %arg3[%c0_23, %c0_24] : memref<4x256xf32, #tpu.memory_space<vmem>>, vector<4x256xf32>
    %cst_25 = arith.constant dense<0.000000e+00> : vector<4x32xf32>
    %40 = tpu.matmul %39, %3, %cst_25 {dimension_numbers = #tpu.dot_dimension_numbers<[1], [0], [0], [1], [0, 0, 1, 1], [], []>} : vector<4x256xf32>, vector<256x32xf32>, vector<4x32xf32> -> vector<4x32xf32>
    %41 = vector.broadcast %4 : vector<1x32xf32> to vector<4x32xf32>
    %42 = arith.addf %40, %41 : vector<4x32xf32>
    %43 = arith.negf %42 : vector<4x32xf32>
    %44 = math.exp %43 : vector<4x32xf32>
    %cst_26 = arith.constant 1.000000e+00 : f32
    %45 = vector.broadcast %cst_26 : f32 to vector<4x32xf32>
    %46 = arith.addf %45, %44 : vector<4x32xf32>
    %47 = arith.divf %45, %46 : vector<4x32xf32>
    %c0_27 = arith.constant 0 : index
    %c0_28 = arith.constant 0 : index
    %48 = vector.load %arg2[%c0_27, %c0_28] : memref<4x32xf32, #tpu.memory_space<vmem>>, vector<4x32xf32>
    tpu.vector_store %arg2[%c0_27, %c0_28], %47 {strides = array<i32>} : memref<4x32xf32, #tpu.memory_space<vmem>>, vector<4x32xf32>,
    return
  }
}

</mosaic_0001>

<bundles_post_ra>
// kernel: tpu_custom_call.1
= control target key start
LH: loop header
LB: loop body
LE: loop exit
PB: predicated region body
PF: predicated region fallthrough
CT: control target
= control target key end

     0   :  { %7 = vsyncpa [#allocation4], 0  ;;  %s1229_s0 = inlined_call_operand.hbm [shape: f32[4,16], index: 0, kind: input, shape index: {}]   ;;  %s1230_s1 = inlined_call_operand.hbm [shape: f32[320,128], index: 1, kind: input, shape index: {}]   ;;  %s1231_s2 = inlined_call_operand.hbm [shape: f32[4,32], index: 2, kind: output, shape index: {}]  }
   0x1   :  { %8 = vsyncpa [#allocation7], 0 }
   0x2   :  { %9 = vsyncpa [#allocation5], 0  ;;  %s1081_s9 = smov [#allocation3]   ;;  %s1082_s11 = smov [#allocation6]  }
   0x3   :  { %s16_s10 = sshll.u32 %s1081_s9, 4  ;;  %s25_s12 = sshll.u32 %s1082_s11, 4  ;;  %s17_s10 = int_to_ptr.vmem [resolvable:$true] %s16_s10  ;;  %s26_s12 = int_to_ptr.vmem [resolvable:$true] %s25_s12 }
   0x4   :  { %s1023_s13 = scalar_lea.vmem %s17_s10, 64  ;;  %p1028_p1 = scmp.lt.s32.totalorder %s17_s10, %s17_s10 }
   0x5   :  { %p1024_p0 = scmp.ne.s32.totalorder %s17_s10, %s1023_s13  ;;  %p1029_p2 = scmp.lt.s32.totalorder %s1023_s13, %s1023_s13 }
   0x7   :  { %p1030_p3 = por %p1029_p2, %p1028_p1 }
   0x9   :  { %p1031_p4 = pnand %p1030_p3, %p1024_p0 }
   0xb   :  { %1034 = shalt.err (!%p1031_p4)
}
   0xc   :  { %19 = dma.hbm_to_vmem [thread:$0]  %s1229_s0, 64, %s17_s10, [#allocation4]  }
   0xd   :  { %s1043_s16 = scalar_lea.vmem %s26_s12, 5120  ;;  %p1048_p6 = scmp.lt.s32.totalorder %s26_s12, %s26_s12 }
   0xe   :  { %p1044_p5 = scmp.ne.s32.totalorder %s26_s12, %s1043_s16  ;;  %p1049_p7 = scmp.lt.s32.totalorder %s1043_s16, %s1043_s16 }
  0x10   :  { %p1050_p8 = por %p1049_p7, %p1048_p6 }
  0x12   :  { %p1051_p9 = pnand %p1050_p8, %p1044_p5 }
  0x14   :  { %1054 = shalt.err (!%p1051_p9)
}
  0x15   :  { %s1083_s17 = smov 128   ;;  %s1084_s18 = smov 8  }
  0x16   :  { %31 = dma.hbm_to_vmem [thread:$0]  %s1230_s1, 5120, %s26_s12, [#allocation7], %s1083_s17, %s1083_s17, %s1084_s18  }
  0x17   :  { %1075 = dma.done.wait [#allocation4], 64  }
  0x18   :  { %1076 = vsyncadd [#allocation4], 4294967232 }
  0x19   :  { %1077 = dma.done.wait [#allocation7], 5120  }
  0x1a   :  { %1078 = vsyncadd [#allocation7], 4294962176  ;;  %v1085_v0 = vmov 0.0   ;;  %vm1086_vm0 = vmmov 0   ;;  %v39_v1 = vld [vmem:[#allocation6 + $0x8] sm:$0xff]  ;;  %v38_v2 = vld [vmem:[#allocation6] sm:$0xff] }
  0x1b   :  { %900 = vmatprep.subr.mxu1 %v1085_v0  ;;  %904 = vmatprep.mubr.msk.f32.mxu1 %vm1086_vm0, %v1085_v0  ;;  %v78_v3 = vld [vmem:[#allocation3] sm:$0xf]  ;;  %vm83_vm1 = vcmask 130048   ;;  %v1122_v4 = vld [vmem:[#allocation6 + $0x28] sm:$0xff]  ;;  %v1124_v5 = vld [vmem:[#allocation6 + $0x20] sm:$0xff]  ;;  %vm160_vm2 = vcmask 261120  }
  0x1c   :  { %940 = vmatprep.subr.mxu0 %v1085_v0  ;;  %948 = vmatprep.mubr.msk.f32.mxu0 %vm1086_vm0, %v1085_v0  ;;  %v1129_v6 = vld [vmem:[#allocation6 + $0x18] sm:$0xff]  ;;  %v1135_v7 = vld [vmem:[#allocation6 + $0x10] sm:$0xff]  ;;  %vm158_vm3 = vcmask 257024   ;;  %s1087_s0 = smov 32   ;;  %vm240_vm4 = vcmask 519424   ;;  %s1088_s1 = smov 64  }
  0x1d   :  { %901 = vmatpush3.msra.mxu1 %v39_v1  ;;  %941 = vmatpush3.msra.mxu0 %v1122_v4  ;;  %v816_v8 = vld [vmem:[#allocation6 + $0x30] ss:$0 sm:$0xff]  ;;  %vm320_vm5 = vcmask 781824   ;;  %s1089_s21 = smov 96   ;;  %vm400_vm6 = vcmask 1044224   ;;  %v75_v43 = vld [vmem:[#allocation6 + $0x128] sm:$0xff] }
  0x1e   :  { %902 = vmatprep.subr.mxu1 %v1085_v0  ;;  %942 = vmatprep.subr.mxu0 %v1085_v0  ;;  %v76_v41 = vld [vmem:[#allocation6 + $0x130] sm:$0xff]  ;;  %v59_v44 = vld [vmem:[#allocation6 + $0xa8] sm:$0xff]  ;;  %v74_v45 = vld [vmem:[#allocation6 + $0x120] sm:$0xff]  ;;  %s1090_s22 = smov [#allocation8]  }
  0x1f   :  { %903 = vmatpush3.msra.mxu1 %v38_v2  ;;  %943 = vmatpush3.msra.mxu0 %v1124_v5  ;;  %v60_v42 = vld [vmem:[#allocation6 + $0xb0] sm:$0xff]  ;;  %v58_v46 = vld [vmem:[#allocation6 + $0xa0] sm:$0xff]  ;;  %v73_v47 = vld [vmem:[#allocation6 + $0x118] sm:$0xff]  ;;  %s806_s23 = sshll.u32 %s1090_s22, 4  ;;  %s807_s23 = int_to_ptr.vmem [resolvable:$true] %s806_s23 }
  0x20   :  { %905 = vmatmul.mubr.msk.f32.vlgmr.msra.gmra.mxu1 %vm83_vm1, %v78_v3  ;;  %907 = vmatprep.subr.mxu1 %v1085_v0  ;;  %v57_v48 = vld [vmem:[#allocation6 + $0x98] sm:$0xff]  ;;  %v72_v49 = vld [vmem:[#allocation6 + $0x110] sm:$0xff]  ;;  %v71_v51 = vld [vmem:[#allocation6 + $0x108] sm:$0xff]  ;;  %s1055_s24 = scalar_lea.vmem %s807_s23, 64  ;;  %p1060_p11 = scmp.lt.s32.totalorder %s807_s23, %s807_s23 }
  0x21   :  { %915 = vmatprep.mubr.msk.f32.mxu1 %vm1086_vm0, %v1085_v0  ;;  %908 = vmatpush3.msra.mxu1 %v1122_v4  ;;  %v56_v50 = vld [vmem:[#allocation6 + $0x90] sm:$0xff]  ;;  %v55_v52 = vld [vmem:[#allocation6 + $0x88] sm:$0xff]  ;;  %v70_v53 = vld [vmem:[#allocation6 + $0x100] sm:$0xff]  ;;  %p1056_p10 = scmp.ne.s32.totalorder %s807_s23, %s1055_s24  ;;  %p1061_p12 = scmp.lt.s32.totalorder %s1055_s24, %s1055_s24 }
  0x22   :  { %909 = vmatprep.subr.mxu1 %v1085_v0  ;;  %944 = vmatprep.subr.mxu0 %v1085_v0  ;;  %v54_v54 = vld [vmem:[#allocation6 + $0x80] sm:$0xff]  ;;  %v69_v55 = vld [vmem:[#allocation6 + $0xf8] sm:$0xff]  ;;  %v68_v57 = vld [vmem:[#allocation6 + $0xf0] sm:$0xff] }
  0x23   :  { %910 = vmatpush3.msra.mxu1 %v1124_v5  ;;  %945 = vmatpush3.msra.mxu0 %v1129_v6  ;;  %v53_v56 = vld [vmem:[#allocation6 + $0x78] sm:$0xff]  ;;  %v52_v58 = vld [vmem:[#allocation6 + $0x70] sm:$0xff]  ;;  %v67_v59 = vld [vmem:[#allocation6 + $0xe8] sm:$0xff]  ;;  %p1062_p13 = por %p1061_p12, %p1060_p11 }
  0x24   :  { %911 = vmatprep.subr.mxu1 %v1085_v0  ;;  %946 = vmatprep.subr.mxu0 %v1085_v0  ;;  %v51_v60 = vld [vmem:[#allocation6 + $0x68] sm:$0xff]  ;;  %v66_v61 = vld [vmem:[#allocation6 + $0xe0] sm:$0xff]  ;;  %v65_v3 = vld [vmem:[#allocation6 + $0xd8] sm:$0xff] }
  0x25   :  { %912 = vmatpush3.msra.mxu1 %v1129_v6  ;;  %947 = vmatpush3.msra.mxu0 %v1135_v7  ;;  %v50_v2 = vld [vmem:[#allocation6 + $0x60] sm:$0xff]  ;;  %p1063_p0 = pnand %p1062_p13, %p1056_p10 }
  0x26   :  { %913 = vmatprep.subr.mxu1 %v1085_v0  ;;  %962 = vmatprep.subr.mxu0 %v1085_v0 }
  0x27   :  { %914 = vmatpush3.msra.mxu1 %v1135_v7 }
  0x28   :  { %918 = vmatprep.subr.mxu1 %v1085_v0 }
  0xe0   :  { %v153_v9 = vpop.f32.mrf.mxu1 }
  0xe1   :  { %v1146_v10 = vadd.f32 %v816_v8, %v153_v9  ;;  %v47_v8 = vld [vmem:[#allocation6 + $0x48] sm:$0xff]  ;;  %v62_v9 = vld [vmem:[#allocation6 + $0xc0] sm:$0xff] }
  0xe2   :  { %v906_v11 = vpop.f32.mrf.mxu1 }
  0xe3   :  { %995 = vtanh.f32 %v1146_v10  ;;  %v46_v11 = vld [vmem:[#allocation6 + $0x40] sm:$0xff] }
  0xf0   :  { %v996_v12 = vpop.eup %995 }
  0xf1   :  { %916 = vmatmul.mubr.msk.f32.vlgmr.msra.gmra.mxu1 %vm160_vm2, %v996_v12  ;;  %159 = vst.msk [vmem:[#allocation2] sm:$0xf] %vm158_vm3, %v996_v12  ;;  %v61_v12 = vld [vmem:[#allocation6 + $0xb8] sm:$0xff] }
  0xf2   :  { %919 = vmatpush3.msra.mxu1 %v1122_v4  ;;  %926 = vmatprep.mubr.msk.f32.mxu1 %vm1086_vm0, %v1085_v0 }
  0xf3   :  { %920 = vmatprep.subr.mxu1 %v1085_v0 }
  0xf4   :  { %921 = vmatpush3.msra.mxu1 %v1124_v5 }
  0xf5   :  { %922 = vmatprep.subr.mxu1 %v1085_v0 }
  0xf6   :  { %923 = vmatpush3.msra.mxu1 %v1129_v6 }
  0xf7   :  { %924 = vmatprep.subr.mxu1 %v1085_v0 }
  0xf8   :  { %925 = vmatpush3.msra.mxu1 %v1135_v7 }
  0xf9   :  { %929 = vmatprep.subr.mxu1 %v1085_v0 }
 0x1b1   :  { %v230_v13 = vpop.f32.mrf.mxu1 }
 0x1b2   :  { %v234_v14 = vadd.f32 %v230_v13, %v1146_v10 }
 0x1b3   :  { %v917_v15 = vpop.f32.mrf.mxu1 }
 0x1b4   :  { %997 = vtanh.f32 %v234_v14 }
 0x1c1   :  { %v998_v16 = vpop.eup %997 }
 0x1c2   :  { %237 = vrot.lane.b32.xlu0 %v998_v16, %s1087_s0  ;;  %927 = vmatmul.mubr.msk.f32.vlgmr.msra.gmra.mxu1 %vm160_vm2, %v998_v16 }
 0x1c3   :  { %930 = vmatpush3.msra.mxu1 %v1122_v4  ;;  %937 = vmatprep.mubr.msk.f32.mxu1 %vm1086_vm0, %v1085_v0 }
 0x1c4   :  { %931 = vmatprep.subr.mxu1 %v1085_v0 }
 0x1c5   :  { %932 = vmatpush3.msra.mxu1 %v1124_v5 }
 0x1c6   :  { %933 = vmatprep.subr.mxu1 %v1085_v0 }
 0x1c7   :  { %934 = vmatpush3.msra.mxu1 %v1129_v6 }
 0x1c8   :  { %935 = vmatprep.subr.mxu1 %v1085_v0 }
 0x1c9   :  { %936 = vmatpush3.msra.mxu1 %v1135_v7 }
 0x1ca   :  { %951 = vmatprep.subr.mxu1 %v1085_v0 }
 0x234   :  { %v238_v17 = vpop.permute.xlu0 %237 }
 0x235   :  { %241 = vst.msk [vmem:[#allocation2] sm:$0xf] %vm240_vm4, %v238_v17 }
 0x282   :  { %v310_v18 = vpop.f32.mrf.mxu1 }
 0x283   :  { %v314_v19 = vadd.f32 %v310_v18, %v1146_v10  ;;  %v825_v18 = vld [vmem:[#allocation6 + $0x138] ss:$0 sm:$0xff] }
 0x284   :  { %v928_v20 = vpop.f32.mrf.mxu1 }
 0x285   :  { %999 = vtanh.f32 %v314_v19 }
 0x292   :  { %v1000_v21 = vpop.eup %999 }
 0x293   :  { %317 = vrot.lane.b32.xlu1 %v1000_v21, %s1088_s1  ;;  %938 = vmatmul.mubr.msk.f32.vlgmr.msra.gmra.mxu1 %vm160_vm2, %v1000_v21 }
 0x294   :  { %952 = vmatpush3.msra.mxu1 %v1122_v4  ;;  %959 = vmatprep.mubr.msk.f32.mxu1 %vm1086_vm0, %v1085_v0 }
 0x295   :  { %953 = vmatprep.subr.mxu1 %v1085_v0 }
 0x296   :  { %954 = vmatpush3.msra.mxu1 %v1124_v5 }
 0x297   :  { %955 = vmatprep.subr.mxu1 %v1085_v0 }
 0x298   :  { %956 = vmatpush3.msra.mxu1 %v1129_v6 }
 0x299   :  { %957 = vmatprep.subr.mxu1 %v1085_v0 }
 0x29a   :  { %958 = vmatpush3.msra.mxu1 %v1135_v7 }
 0x29b   :  { %973 = vmatprep.subr.mxu1 %v1085_v0 }
 0x305   :  { %v318_v22 = vpop.permute.xlu1 %317 }
 0x306   :  { %321 = vst.msk [vmem:[#allocation2] sm:$0xf] %vm320_vm5, %v318_v22 }
 0x353   :  { %v390_v23 = vpop.f32.mrf.mxu1 }
 0x354   :  { %v394_v24 = vadd.f32 %v390_v23, %v1146_v10 }
 0x355   :  { %v939_v25 = vpop.f32.mrf.mxu1 }
 0x356   :  { %1001 = vtanh.f32 %v394_v24 }
 0x363   :  { %v1002_v26 = vpop.eup %1001 }
 0x364   :  { %949 = vmatmul.mubr.msk.f32.vlgmr.msra.gmra.mxu0 %vm160_vm2, %v1002_v26 }
 0x365   :  { %963 = vmatpush3.msra.mxu0 %v1122_v4  ;;  %970 = vmatprep.mubr.msk.f32.mxu0 %vm1086_vm0, %v1085_v0 }
 0x366   :  { %964 = vmatprep.subr.mxu0 %v1085_v0 }
 0x367   :  { %965 = vmatpush3.msra.mxu0 %v1124_v5 }
 0x368   :  { %966 = vmatprep.subr.mxu0 %v1085_v0 }
 0x369   :  { %967 = vmatpush3.msra.mxu0 %v1129_v6 }
 0x36a   :  { %968 = vmatprep.subr.mxu0 %v1085_v0 }
 0x36b   :  { %969 = vmatpush3.msra.mxu0 %v1135_v7 }
 0x36c   :  { %865 = vmatprep.subr.mxu0 %v76_v41 }
 0x424   :  { %v470_v27 = vpop.f32.mrf.mxu0 }
 0x425   :  { %v474_v28 = vadd.f32 %v470_v27, %v1146_v10 }
 0x426   :  { %v950_v29 = vpop.f32.mrf.mxu0 }
 0x427   :  { %1003 = vtanh.f32 %v474_v28 }
 0x434   :  { %v1004_v30 = vpop.eup %1003 }
 0x435   :  { %476 = vst.msk [vmem:[#allocation2 + $0x4] sm:$0xf] %vm158_vm3, %v1004_v30  ;;  %960 = vmatmul.mubr.msk.f32.vlgmr.msra.gmra.mxu1 %vm160_vm2, %v1004_v30 }
 0x436   :  { %974 = vmatpush3.msra.mxu1 %v1122_v4  ;;  %981 = vmatprep.mubr.msk.f32.mxu1 %vm1086_vm0, %v1085_v0  ;;  %v49_v4 = vld [vmem:[#allocation6 + $0x58] sm:$0xff] }
 0x437   :  { %975 = vmatprep.subr.mxu1 %v1085_v0 }
 0x438   :  { %976 = vmatpush3.msra.mxu1 %v1124_v5  ;;  %v64_v5 = vld [vmem:[#allocation6 + $0xd0] sm:$0xff] }
 0x439   :  { %977 = vmatprep.subr.mxu1 %v1085_v0 }
 0x43a   :  { %978 = vmatpush3.msra.mxu1 %v1129_v6  ;;  %v48_v6 = vld [vmem:[#allocation6 + $0x50] sm:$0xff] }
 0x43b   :  { %979 = vmatprep.subr.mxu1 %v1085_v0 }
 0x43c   :  { %980 = vmatpush3.msra.mxu1 %v1135_v7  ;;  %v63_v7 = vld [vmem:[#allocation6 + $0xc8] sm:$0xff] }
 0x4f5   :  { %v546_v31 = vpop.f32.mrf.mxu1 }
 0x4f6   :  { %v550_v32 = vadd.f32 %v546_v31, %v1146_v10 }
 0x4f7   :  { %v961_v33 = vpop.f32.mrf.mxu1 }
 0x4f8   :  { %1005 = vtanh.f32 %v550_v32 }
 0x505   :  { %v1006_v34 = vpop.eup %1005 }
 0x506   :  { %553 = vrot.lane.b32.xlu0 %v1006_v34, %s1087_s0  ;;  %971 = vmatmul.mubr.msk.f32.vlgmr.msra.gmra.mxu0 %vm160_vm2, %v1006_v34 }
 0x507   :  { %866 = vmatpush3.msra.mxu0 %v60_v42 }
 0x508   :  { %867 = vmatprep.subr.mxu0 %v75_v43 }
 0x509   :  { %868 = vmatpush3.msra.mxu0 %v59_v44 }
 0x50a   :  { %397 = vrot.lane.b32.xlu0 %v1002_v26, %s1089_s21  ;;  %869 = vmatprep.subr.mxu0 %v74_v45 }
 0x50b   :  { %870 = vmatpush3.msra.mxu0 %v58_v46 }
 0x50c   :  { %871 = vmatprep.subr.mxu0 %v73_v47 }
 0x50d   :  { %872 = vmatpush3.msra.mxu0 %v57_v48 }
 0x50e   :  { %873 = vmatprep.subr.mxu0 %v72_v49 }
 0x50f   :  { %874 = vmatpush3.msra.mxu0 %v56_v50 }
 0x510   :  { %875 = vmatprep.subr.mxu0 %v71_v51 }
 0x511   :  { %876 = vmatpush3.msra.mxu0 %v55_v52 }
 0x512   :  { %877 = vmatprep.subr.mxu0 %v70_v53 }
 0x513   :  { %878 = vmatpush3.msra.mxu0 %v54_v54 }
 0x514   :  { %879 = vmatprep.subr.mxu0 %v69_v55 }
 0x515   :  { %880 = vmatpush3.msra.mxu0 %v53_v56 }
 0x516   :  { %881 = vmatprep.subr.mxu0 %v68_v57 }
 0x517   :  { %882 = vmatpush3.msra.mxu0 %v52_v58 }
 0x518   :  { %883 = vmatprep.subr.mxu0 %v67_v59 }
 0x519   :  { %884 = vmatpush3.msra.mxu0 %v51_v60 }
 0x51a   :  { %885 = vmatprep.subr.mxu0 %v66_v61 }
 0x51b   :  { %886 = vmatpush3.msra.mxu0 %v50_v2 }
 0x51c   :  { %887 = vmatprep.subr.mxu0 %v65_v3 }
 0x51d   :  { %888 = vmatpush3.msra.mxu0 %v49_v4 }
 0x51e   :  { %889 = vmatprep.subr.mxu0 %v64_v5 }
 0x51f   :  { %890 = vmatpush3.msra.mxu0 %v48_v6 }
 0x520   :  { %891 = vmatprep.subr.mxu0 %v63_v7 }
 0x521   :  { %892 = vmatpush3.msra.mxu0 %v47_v8 }
 0x522   :  { %893 = vmatprep.subr.mxu0 %v62_v9 }
 0x523   :  { %894 = vmatpush3.msra.mxu0 %v46_v11 }
 0x524   :  { %895 = vmatprep.subr.mxu0 %v61_v12 }
 0x578   :  { %v554_v35 = vpop.permute.xlu0 %553 }
 0x579   :  { %556 = vst.msk [vmem:[#allocation2 + $0x4] sm:$0xf] %vm240_vm4, %v554_v35 }
 0x57c   :  { %v398_v36 = vpop.permute.xlu0 %397 }
 0x57d   :  { %401 = vst.msk [vmem:[#allocation2] sm:$0xf] %vm400_vm6, %v398_v36 }
 0x5c6   :  { %v625_v37 = vpop.f32.mrf.mxu0 }
 0x5c7   :  { %v629_v38 = vadd.f32 %v625_v37, %v1146_v10 }
 0x5c8   :  { %v972_v39 = vpop.f32.mrf.mxu0 }
 0x5c9   :  { %1007 = vtanh.f32 %v629_v38 }
 0x5d6   :  { %v1008_v40 = vpop.eup %1007 }
 0x5d7   :  { %632 = vrot.lane.b32.xlu1 %v1008_v40, %s1088_s1  ;;  %982 = vmatmul.mubr.msk.f32.vlgmr.msra.gmra.mxu1 %vm160_vm2, %v1008_v40 }
 0x649   :  { %v633_v62 = vpop.permute.xlu1 %632 }
 0x64a   :  { %635 = vst.msk [vmem:[#allocation2 + $0x4] sm:$0xf] %vm320_vm5, %v633_v62 }
 0x697   :  { %v704_v63 = vpop.f32.mrf.mxu1 }
 0x698   :  { %v708_v0 = vadd.f32 %v704_v63, %v1146_v10  ;;  %v45_v10 = vld [vmem:[#allocation6 + $0x38] sm:$0xff] }
 0x699   :  { %v983_v1 = vpop.f32.mrf.mxu1  ;;  %896 = vmatpush3.msra.mxu0 %v45_v10 }
 0x69a   :  { %1009 = vtanh.f32 %v708_v0 }
 0x6a7   :  { %v1010_v13 = vpop.eup %1009 }
 0x6a8   :  { %711 = vrot.lane.b32.xlu1 %v1010_v13, %s1089_s21 }
 0x71a   :  { %v712_v14 = vpop.permute.xlu1 %711 }
 0x71b   :  { %714 = vst.msk [vmem:[#allocation2 + $0x4] sm:$0xf] %vm400_vm6, %v712_v14 }
 0x722   :  { %v715_v15 = vld [vmem:[#allocation2] sm:$0xff] }
 0x723   :  { %v721_v16 = vcombine.high %v715_v15, %v715_v15 }
 0x725   :  { %787 = vmatprep.mubr.f32.mxu0 %v721_v16 }
 0x726   :  { %788 = vmatmul.mubr.f32.vlgmr.msra.gmra.mxu0 %v715_v15 }
 0x7e6   :  { %v897_v17 = vpop.f32.mrf.mxu0 }
 0x7e8   :  { %v898_v19 = vpop.f32.mrf.mxu0 }
 0x7e9   :  { %v899_v20 = vadd.f32 %v898_v19, %v897_v17 }
 0x7eb   :  { %v790_v21 = vadd.f32 %v899_v20, %v825_v18 }
 0x7ed   :  { %v826_v22 = vmul.f32 -1.442695, %v790_v21 }
 0x7ef   :  { %1011 = vpow2.f32 %v826_v22 }
 0x7fc   :  { %v1012_v23 = vpop.eup %1011 }
 0x7fd   :  { %v796_v24 = vadd.f32 1.0, %v1012_v23 }
 0x7ff   :  { %1013 = vrcp.f32 %v796_v24 }
 0x80c   :  { %v1014_v25 = vpop.eup %1013 }
 0x80d   :  { %799 = vst.msk [vmem:[#allocation8] sm:$0xf] %vm158_vm3, %v1014_v25 }
 0x80e   :  { %1066 = shalt.err (!%p1063_p0)
}
 0x80f   :  { %809 = dma.vmem_to_hbm [thread:$0]  %s807_s23, 64, %s1231_s2, [#allocation5]  }
 0x810   :  { %1079 = dma.done.wait [#allocation5], 64  }
 0x811   :  { %1080 = vsyncadd [#allocation5], 4294967232 }
 0x812   :  { %813 = vsyncpa [#allocation4], 1 }
 0x813   :  { %814 = vsyncpa [#allocation7], 1 }
 0x814   :  { %815 = vsyncpa [#allocation5], 1 }

</bundles_post_ra>
